<compile_context>
chip_gen: v5e
topology: v5e:2x2
jax: 0.10.0
libtpu: 0.0.40
codegen_flags: <defaults>
</compile_context>

<pallas_src>
from functools import partial

import jax
import jax.numpy as jnp
from jax import lax
from jax.experimental import pallas as pl
from jax.experimental.pallas import tpu as pltpu


def _round_up(x, m):
    return (x + m - 1) // m * m


# ----------------------------------------------------------------------------- kernel --
def _encoder_kernel(p_ref, wc_ref, bc_ref, wp_ref, bp_ref, o_ref):
    # p_ref : (Rp, Kp)  bf16 im2col patches (all batch elements, rows = B*P, zero-padded)
    # wc_ref: (Kp, Fp)  bf16 conv weight as a matrix (zero-padded)
    # bc_ref: (1, Fp)   f32 conv bias (zero-padded)
    # wp_ref: (Fp, Dp)  bf16 visual_projection weight (zero-padded)
    # bp_ref: (1, Dp)   f32 visual_projection bias (zero-padded)
    # o_ref : (Rp, Dp)  f32 output
    feats = jnp.dot(p_ref[...], wc_ref[...],
                    preferred_element_type=jnp.float32)          # conv-as-matmul (MXU)
    feats = jnp.maximum(feats + bc_ref[...], 0.0)                 # bias + ReLU (f32 VPU)
    # dropout_out has p=0.0 -> identity (eval semantics)
    out = jnp.dot(feats.astype(wp_ref.dtype), wp_ref[...],
                  preferred_element_type=jnp.float32)             # visual_projection (MXU)
    o_ref[...] = (out + bp_ref[...]).astype(o_ref.dtype)


# ----------------------------------------------------------- one-time parameter prep --
def prepare_params(w_conv, b_conv, w_proj, b_proj, *, compute_dtype=jnp.bfloat16):
    """One-time weight/bias preparation.  Call ONCE at module init and reuse the result
    across forwards: the reshape/transpose/cast/pad glue must not run per call."""
    F, C, kh, kw = w_conv.shape
    K = C * kh * kw
    D = w_proj.shape[1]
    assert w_proj.shape[0] == F

    LANE = 128
    Kp = _round_up(K, LANE)
    Fp = _round_up(F, LANE)
    Dp = _round_up(D, LANE)

    wc_p = jnp.pad(w_conv.reshape(F, K).T.astype(compute_dtype),
                   ((0, Kp - K), (0, Fp - F)))
    bc_p = jnp.pad(b_conv.reshape(1, F).astype(jnp.float32), ((0, 0), (0, Fp - F)))
    wp_p = jnp.pad(w_proj.astype(compute_dtype), ((0, Fp - F), (0, Dp - D)))
    bp_p = jnp.pad(b_proj.reshape(1, D).astype(jnp.float32), ((0, 0), (0, Dp - D)))
    return {"wc": wc_p, "bc": bc_p, "wp": wp_p, "bp": bp_p}


# ---------------------------------------------------------------------- jitted forward --
@partial(jax.jit, static_argnames=("d_out", "kernel", "stride", "unpad_output"))
def visual_encoder_forward(images, params, *, d_out, kernel=4, stride=4,
                           unpad_output=True):
    """images: [B, C, H, W] (NCHW). Returns [B, H'*W', D] ('batch_first' permute),
    or the lane-/row-padded (Rp, Dp) kernel output if unpad_output=False."""
    B, C, H, W = images.shape

    # im2col here assumes non-overlapping, exactly-tiling patches (stride == kernel).
    assert stride == kernel, "im2col path requires stride == kernel"
    assert H % stride == 0 and W % stride == 0, "H, W must be divisible by stride"

    Hp, Wp = H // stride, W // stride
    P = Hp * Wp
    K = C * kernel * kernel
    R = B * P

    Kp, Fp = params["wc"].shape
    Dp = params["wp"].shape[1]
    compute_dtype = params["wc"].dtype
    assert Kp >= K and params["wp"].shape[0] == Fp and Dp >= d_out

    # bf16 packs 16 sublanes per vreg -> pad rows to 16 so no relayout before the MXU.
    sub = 16 if jnp.dtype(compute_dtype).itemsize == 2 else 8
    Rp = _round_up(R, sub)

    # --- per-call glue: im2col (non-overlapping patches), batch folded into rows.
    # (C, kh, kw) flattening order matches PyTorch conv weights; the P axis already
    # equals the 'batch_first' spatial-flatten order, so the permute is absorbed here.
    # With allow_input_fusion below, XLA may fuse this chain into the kernel input.
    x = images.reshape(B, C, Hp, kernel, Wp, kernel)
    x = jnp.transpose(x, (0, 2, 4, 1, 3, 5))                      # [B, Hp, Wp, C, kh, kw]
    patches = x.reshape(R, K).astype(compute_dtype)
    patches_p = jnp.pad(patches, ((0, Rp - R), (0, Kp - K)))

    itemsize = jnp.dtype(compute_dtype).itemsize
    cost = pl.CostEstimate(
        flops=2 * Rp * (Kp * Fp + Fp * Dp),
        transcendentals=0,
        bytes_accessed=(Rp * Kp + Kp * Fp + Fp * Dp) * itemsize
                       + (Fp + Dp + Rp * Dp) * 4,
    )

    out_padded = pl.pallas_call(
        _encoder_kernel,
        out_shape=jax.ShapeDtypeStruct((Rp, Dp), jnp.float32),
        # No grid: a single whole-array invocation — no pipeline prologue/epilogue,
        # no double-buffered VMEM for the constant weights.
        in_specs=[pl.BlockSpec(memory_space=pltpu.MemorySpace.VMEM)] * 5,
        out_specs=pl.BlockSpec(memory_space=pltpu.MemorySpace.VMEM),
        compiler_params=pltpu.CompilerParams(
            # Let XLA fuse the im2col/pad/cast producer into the patches operand.
            allow_input_fusion=[True, False, False, False, False]),
        cost_estimate=cost,
    )(patches_p, params["wc"], params["bc"], params["wp"], params["bp"])

    if not unpad_output:
        return out_padded                                          # (Rp, Dp), zero extra copies
    # Single tiny fused slice+reshape back to the exact PyTorch output shape.
    return out_padded[:R, :d_out].reshape(B, P, d_out)


# -------------------------------------------------------------------------- references --
def visual_encoder_reference_f32(images, w_conv, b_conv, w_proj, b_proj, *, stride=4):
    """Pure-JAX f32 reference mirroring the PyTorch forward exactly."""
    feats = lax.conv_general_dilated(
        images, w_conv, window_strides=(stride, stride), padding="VALID",
        dimension_numbers=("NCHW", "OIHW", "NCHW"))
    feats = feats + b_conv[None, :, None, None]
    feats = jnp.maximum(feats, 0.0)                               # ReLU
    # dropout p=0.0 -> identity
    B, F = feats.shape[0], feats.shape[1]
    out = feats.reshape(B, F, -1)                                 # out.view(B, C, -1)
    out = jnp.transpose(out, (0, 2, 1))                           # .permute(0, 2, 1) 'batch_first'
    out = out @ w_proj + b_proj                                   # visual_projection
    return out


def visual_encoder_reference_bf16(images, w_conv, b_conv, w_proj, b_proj, *,
                                  kernel=4, stride=4, compute_dtype=jnp.bfloat16):
    """Pure-JAX reference with the same bf16-operand / f32-accumulate numerics as the kernel."""
    B, C, H, W = images.shape
    F = w_conv.shape[0]
    D = w_proj.shape[1]
    Hp, Wp = H // stride, W // stride
    x = images.reshape(B, C, Hp, kernel, Wp, kernel)
    x = jnp.transpose(x, (0, 2, 4, 1, 3, 5)).reshape(B * Hp * Wp, C * kernel * kernel)
    wc = w_conv.reshape(F, -1).T
    feats = jnp.dot(x.astype(compute_dtype), wc.astype(compute_dtype),
                    preferred_element_type=jnp.float32)
    feats = jnp.maximum(feats + b_conv.reshape(1, F), 0.0)
    out = jnp.dot(feats.astype(compute_dtype), w_proj.astype(compute_dtype),
                  preferred_element_type=jnp.float32) + b_proj.reshape(1, D)
    return out.reshape(B, Hp * Wp, D)


if __name__ == "__main__":
    key = jax.random.PRNGKey(0)
    k_img, k_wc, k_bc, k_wp, k_bp = jax.random.split(key, 5)

    B, C, H, W = 2, 4, 16, 16
    F, D = 32, 48
    KER = 4

    images = jax.random.normal(k_img, (B, C, H, W), dtype=jnp.float32)
    w_conv = jax.random.normal(k_wc, (F, C, KER, KER), dtype=jnp.float32) * 0.1
    b_conv = jax.random.normal(k_bc, (F,), dtype=jnp.float32) * 0.1
    w_proj = jax.random.normal(k_wp, (F, D), dtype=jnp.float32) * 0.1
    b_proj = jax.random.normal(k_bp, (D,), dtype=jnp.float32) * 0.1

    # One-time init (hoisted weight prep), then the cheap per-call forward.
    params = prepare_params(w_conv, b_conv, w_proj, b_proj)
    params = jax.block_until_ready(params)

    out = visual_encoder_forward(images, params, d_out=D, kernel=KER, stride=KER)
    out = jax.block_until_ready(out)
    assert out.shape == (B, (H // KER) * (W // KER), D), out.shape

    # 1) tight check vs. a reference with identical bf16-operand / f32-accumulate numerics
    ref_bf16 = visual_encoder_reference_bf16(images, w_conv, b_conv, w_proj, b_proj,
                                             kernel=KER, stride=KER)
    assert jnp.allclose(out, ref_bf16, atol=2e-3, rtol=2e-3), \
        float(jnp.max(jnp.abs(out - ref_bf16)))

    # 2) loose check vs. the exact f32 PyTorch-semantics reference (bf16 operand rounding)
    ref_f32 = visual_encoder_reference_f32(images, w_conv, b_conv, w_proj, b_proj, stride=KER)
    assert jnp.allclose(out, ref_f32, atol=3e-2, rtol=3e-2), \
        float(jnp.max(jnp.abs(out - ref_f32)))

    print("KERNEL_OK")
</pallas_src>

<mosaic_0001>
module attributes {stable_mosaic.version = 11 : i64} {
  func.func @_encoder_kernel(%arg0: memref<32x128xbf16, #tpu.memory_space<vmem>>, %arg1: memref<128x128xbf16, #tpu.memory_space<vmem>>, %arg2: memref<1x128xf32, #tpu.memory_space<vmem>>, %arg3: memref<128x128xbf16, #tpu.memory_space<vmem>>, %arg4: memref<1x128xf32, #tpu.memory_space<vmem>>, %arg5: memref<32x128xf32, #tpu.memory_space<vmem>>) attributes {dimension_semantics = [], scalar_prefetch = 0 : i64, scratch_operands = 0 : i64, tpu.core_type = #tpu.core_type<tc>} {
    %c0 = arith.constant 0 : index
    %c0_0 = arith.constant 0 : index
    %0 = vector.load %arg0[%c0, %c0_0] : memref<32x128xbf16, #tpu.memory_space<vmem>>, vector<32x128xbf16>
    %c0_1 = arith.constant 0 : index
    %c0_2 = arith.constant 0 : index
    %1 = vector.load %arg1[%c0_1, %c0_2] : memref<128x128xbf16, #tpu.memory_space<vmem>>, vector<128x128xbf16>
    %cst = arith.constant dense<0.000000e+00> : vector<32x128xf32>
    %2 = tpu.matmul %0, %1, %cst {dimension_numbers = #tpu.dot_dimension_numbers<[1], [0], [0], [1], [0, 0, 1, 1], [], []>} : vector<32x128xbf16>, vector<128x128xbf16>, vector<32x128xf32> -> vector<32x128xf32>
    %c0_3 = arith.constant 0 : index
    %c0_4 = arith.constant 0 : index
    %3 = vector.load %arg2[%c0_3, %c0_4] : memref<1x128xf32, #tpu.memory_space<vmem>>, vector<1x128xf32>
    %4 = vector.broadcast %3 : vector<1x128xf32> to vector<32x128xf32>
    %5 = arith.addf %2, %4 : vector<32x128xf32>
    %cst_5 = arith.constant 0.000000e+00 : f32
    %6 = vector.broadcast %cst_5 : f32 to vector<32x128xf32>
    %7 = arith.maximumf %5, %6 : vector<32x128xf32>
    %8 = arith.truncf %7 : vector<32x128xf32> to vector<32x128xbf16>
    %c0_6 = arith.constant 0 : index
    %c0_7 = arith.constant 0 : index
    %9 = vector.load %arg3[%c0_6, %c0_7] : memref<128x128xbf16, #tpu.memory_space<vmem>>, vector<128x128xbf16>
    %cst_8 = arith.constant dense<0.000000e+00> : vector<32x128xf32>
    %10 = tpu.matmul %8, %9, %cst_8 {dimension_numbers = #tpu.dot_dimension_numbers<[1], [0], [0], [1], [0, 0, 1, 1], [], []>} : vector<32x128xbf16>, vector<128x128xbf16>, vector<32x128xf32> -> vector<32x128xf32>
    %c0_9 = arith.constant 0 : index
    %c0_10 = arith.constant 0 : index
    %11 = vector.load %arg4[%c0_9, %c0_10] : memref<1x128xf32, #tpu.memory_space<vmem>>, vector<1x128xf32>
    %12 = vector.broadcast %11 : vector<1x128xf32> to vector<32x128xf32>
    %13 = arith.addf %10, %12 : vector<32x128xf32>
    %c0_11 = arith.constant 0 : index
    %c0_12 = arith.constant 0 : index
    %14 = vector.load %arg5[%c0_11, %c0_12] : memref<32x128xf32, #tpu.memory_space<vmem>>, vector<32x128xf32>
    tpu.vector_store %arg5[%c0_11, %c0_12], %13 {strides = array<i32>} : memref<32x128xf32, #tpu.memory_space<vmem>>, vector<32x128xf32>,
    return
  }
}

</mosaic_0001>

<bundles_post_ra>
// kernel: visual_encoder_forward.2
= control target key start
LH: loop header
LB: loop body
LE: loop exit
PB: predicated region body
PF: predicated region fallthrough
CT: control target
= control target key end

     0   :  { %s579_s0 = inlined_call_operand.vmem [shape: bf16[128,128], index: 0, kind: input, shape index: {}]   ;;  %s580_s1 = inlined_call_operand.vmem [shape: f32[1,128], index: 1, kind: input, shape index: {}]   ;;  %s581_s2 = inlined_call_operand.vmem [shape: bf16[128,128], index: 2, kind: input, shape index: {}]   ;;  %s582_s3 = inlined_call_operand.vmem [shape: f32[1,128], index: 3, kind: input, shape index: {}]   ;;  %s583_s4 = inlined_call_operand.vmem [shape: bf16[32,64], index: 4, kind: input, shape index: {}]   ;;  %s584_s5 = inlined_call_operand.<no memory space> [shape: bf16[], index: 5, kind: input, shape index: {}]   ;;  %s585_s6 = inlined_call_operand.hbm [shape: f32[32,128], index: 6, kind: output, shape index: {}]  }
   0x1   :  { %v11_v0 = vstv %s584_s5 }
   0x2   :  { %v12_v1 = vunpack.i.l.bf16 %v11_v0 }
   0x3   :  { %v419_v2 = vld [vmem:[%s579_s0 + $0x38] sm:$0xff]  ;;  %v39_v3 = vlaneseq  ;;  %v418_v4 = vld [vmem:[%s579_s0 + $0x30] sm:$0xff]  ;;  %v36_v5 = vld [vmem:[%s583_s4] sm:$0xff]  }
   0x4   :  { %201 = vmatpush.bf16.msra.mxu0 %v419_v2  ;;  %428 = vmatpush.bf16.msra.mxu2 %v419_v2  ;;  %v37_v7 = vunpack.c.l.bf16 %v36_v5  ;;  %v59_v8 = vunpack.c.h.bf16 %v36_v5  ;;  %v336_v9 = vld [vmem:[%s583_s4 + $0x8] sm:$0xff]   ;;  %v427_v10 = vld [vmem:[%s581_s2 + $0x38] sm:$0xff]  ;;  %v426_v15 = vld [vmem:[%s581_s2 + $0x30] sm:$0xff] }
   0x5   :  { %v40_v6 = vand.u32 127, %v39_v3  ;;  %v82_v11 = vunpack.c.l.bf16 %v336_v9  ;;  %v105_v12 = vunpack.c.h.bf16 %v336_v9  ;;  %294 = vmatpush.bf16.msra.mxu1 %v427_v10  ;;  %436 = vmatpush.bf16.msra.mxu3 %v427_v10 }
   0x7   :  { %vm42_vm0 = vcmp.lt.s32.totalorder %v40_v6, 64 }
   0x8   :  { %v43_v13 = vsel %vm42_vm0, %v37_v7, %v12_v1  ;;  %v65_v14 = vsel %vm42_vm0, %v59_v8, %v12_v1 }
   0x9   :  { %16 = vsyncpa [#allocation8], 0  ;;  %202 = vmatpush.bf16.msra.mxu0 %v418_v4  ;;  %429 = vmatpush.bf16.msra.mxu2 %v418_v4  ;;  %v417_v16 = vld [vmem:[%s579_s0 + $0x28] sm:$0xff]  ;;  %v44_v17 = vpack.c.bf16 0.0, %v43_v13  ;;  %v67_v18 = vpack.c.bf16 0.0, %v65_v14  ;;  %v88_v19 = vsel %vm42_vm0, %v82_v11, %v12_v1  ;;  %v111_v20 = vsel %vm42_vm0, %v105_v12, %v12_v1  ;;  %v416_v24 = vld [vmem:[%s579_s0 + $0x20] sm:$0xff] }
   0xa   :  { %v90_v21 = vpack.c.bf16 0.0, %v88_v19  ;;  %v113_v22 = vpack.c.bf16 0.0, %v111_v20  ;;  %295 = vmatpush.bf16.msra.mxu1 %v426_v15  ;;  %v425_v23 = vld [vmem:[%s581_s2 + $0x28] sm:$0xff]  ;;  %437 = vmatpush.bf16.msra.mxu3 %v426_v15  ;;  %v424_v25 = vld [vmem:[%s581_s2 + $0x20] sm:$0xff]  ;;  %v415_v26 = vld [vmem:[%s579_s0 + $0x18] sm:$0xff]  ;;  %s323_s12 = sshll.u32 %s585_s6, 4  ;;  %s324_s12 = int_to_ptr.hbm [resolvable:$true] %s323_s12 }
   0xb   :  { %47 = vst [vmem:[#allocation9] sm:$0xf] %v44_v17  ;;  %v414_v27 = vld [vmem:[%s579_s0 + $0x10] sm:$0xff]  ;;  %v413_v28 = vld [vmem:[%s579_s0 + $0x8] sm:$0xff]  ;;  %v412_v29 = vld [vmem:[%s579_s0] sm:$0xff]  ;;  %s477_s13 = smov 8  }
   0xc   :  { %70 = vst [vmem:[#allocation9 + $0x4] sm:$0xf] %v67_v18  ;;  %v423_v32 = vld [vmem:[%s581_s2 + $0x18] sm:$0xff]  ;;  %v422_v33 = vld [vmem:[%s581_s2 + $0x10] sm:$0xff]  ;;  %v421_v34 = vld [vmem:[%s581_s2 + $0x8] sm:$0xff] }
   0xd   :  { %203 = vmatpush.bf16.msra.mxu0 %v417_v16  ;;  %430 = vmatpush.bf16.msra.mxu2 %v417_v16  ;;  %93 = vst [vmem:[#allocation9 + $0x8] sm:$0xf] %v90_v21  ;;  %v420_v35 = vld [vmem:[%s581_s2] sm:$0xff] }
   0xe   :  { %116 = vst [vmem:[#allocation9 + $0xc] sm:$0xf] %v113_v22  ;;  %296 = vmatpush.bf16.msra.mxu1 %v425_v23  ;;  %438 = vmatpush.bf16.msra.mxu3 %v425_v23  ;;  %v447_v37 = vld [vmem:[%s580_s1] ss:$0 sm:$0xff]  ;;  %s475_s1 = smov [#allocation7]  }
   0xf   :  { %v448_v51 = vld [vmem:[%s582_s3] ss:$0 sm:$0xff]  ;;  %s321_s10 = sshll.u32 %s475_s1, 4  ;;  %s476_s3 = smov 128   ;;  %s322_s10 = int_to_ptr.vmem [resolvable:$true] %s321_s10 }
  0x11   :  { %204 = vmatpush.bf16.msra.mxu0 %v416_v24  ;;  %431 = vmatpush.bf16.msra.mxu2 %v416_v24 }
  0x12   :  { %297 = vmatpush.bf16.msra.mxu1 %v424_v25  ;;  %439 = vmatpush.bf16.msra.mxu3 %v424_v25 }
  0x13   :  { %v410_v30 = vld [vmem:[#allocation9] sm:$0xff] }
  0x15   :  { %205 = vmatpush.bf16.msra.mxu0 %v415_v26  ;;  %432 = vmatpush.bf16.msra.mxu2 %v415_v26  ;;  %v411_v31 = vld [vmem:[#allocation9 + $0x8] sm:$0xff] }
  0x16   :  { %298 = vmatpush.bf16.msra.mxu1 %v423_v32  ;;  %440 = vmatpush.bf16.msra.mxu3 %v423_v32 }
  0x19   :  { %206 = vmatpush.bf16.msra.mxu0 %v414_v27  ;;  %433 = vmatpush.bf16.msra.mxu2 %v414_v27 }
  0x1a   :  { %299 = vmatpush.bf16.msra.mxu1 %v422_v33  ;;  %441 = vmatpush.bf16.msra.mxu3 %v422_v33 }
  0x1d   :  { %207 = vmatpush.bf16.msra.mxu0 %v413_v28  ;;  %434 = vmatpush.bf16.msra.mxu2 %v413_v28 }
  0x1e   :  { %300 = vmatpush.bf16.msra.mxu1 %v421_v34  ;;  %442 = vmatpush.bf16.msra.mxu3 %v421_v34 }
  0x21   :  { %208 = vmatpush.bf16.msra.mxu0 %v412_v29  ;;  %435 = vmatpush.bf16.msra.mxu2 %v412_v29 }
  0x22   :  { %301 = vmatpush.bf16.msra.mxu1 %v420_v35  ;;  %443 = vmatpush.bf16.msra.mxu3 %v420_v35 }
  0x24   :  { %209 = vmatmul.bf16.vlgmr.msra.gmra.mxu0 %v410_v30  ;;  %214 = vmatmul.bf16.vlgmr.msra.gmra.mxu2 %v411_v31 }
  0xa1   :  { %v210_v36 = vpop.f32.mrf.mxu0 }
  0xa2   :  { %v211_v38 = vadd.f32 %v447_v37, %v210_v36 }
  0xa4   :  { %v220_v41 = vmax.f32 %v211_v38, 0.0 }
  0xa7   :  { %v215_v39 = vpop.f32.mrf.mxu2 }
  0xa8   :  { %v216_v44 = vadd.f32 %v447_v37, %v215_v39 }
  0xa9   :  { %v212_v40 = vpop.f32.mrf.mxu0 }
  0xaa   :  { %v213_v42 = vadd.f32 %v447_v37, %v212_v40  ;;  %v222_v48 = vmax.f32 %v216_v44, 0.0 }
  0xac   :  { %v221_v43 = vmax.f32 %v213_v42, 0.0 }
  0xae   :  { %v224_v45 = vpack.c.bf16 %v221_v43, %v220_v41 }
  0xaf   :  { %v217_v46 = vpop.f32.mrf.mxu2 }
  0xb0   :  { %v218_v47 = vadd.f32 %v447_v37, %v217_v46  ;;  %302 = vmatmul.bf16.vlgmr.msra.gmra.mxu1 %v224_v45 }
  0xb2   :  { %v223_v49 = vmax.f32 %v218_v47, 0.0 }
  0xb4   :  { %v225_v50 = vpack.c.bf16 %v223_v49, %v222_v48 }
  0xb6   :  { %307 = vmatmul.bf16.vlgmr.msra.gmra.mxu3 %v225_v50 }
 0x12d   :  { %v303_v52 = vpop.f32.mrf.mxu1 }
 0x12e   :  { %v304_v53 = vadd.f32 %v448_v51, %v303_v52 }
 0x130   :  { %313 = vst [vmem:[#allocation7] sm:$0xff] %v304_v53 }
 0x135   :  { %v305_v54 = vpop.f32.mrf.mxu1 }
 0x136   :  { %v306_v55 = vadd.f32 %v448_v51, %v305_v54 }
 0x138   :  { %314 = vst [vmem:[#allocation7 + $0x8] sm:$0xff] %v306_v55 }
 0x139   :  { %v308_v56 = vpop.f32.mrf.mxu3 }
 0x13a   :  { %v309_v57 = vadd.f32 %v448_v51, %v308_v56 }
 0x13c   :  { %315 = vst [vmem:[#allocation7 + $0x10] sm:$0xff] %v309_v57 }
 0x141   :  { %v310_v58 = vpop.f32.mrf.mxu3 }
 0x142   :  { %v311_v59 = vadd.f32 %v448_v51, %v310_v58 }
 0x144   :  { %316 = vst [vmem:[#allocation7 + $0x18] sm:$0xff] %v311_v59 }
 0x145   :  { %329 = dma.vmem_to_hbm [thread:$0]  %s322_s10, 512, %s324_s12, [#allocation8], %s476_s3, %s476_s3, %s477_s13  }
 0x146   :  { %473 = dma.done.wait [#allocation8], 512  }
 0x147   :  { %474 = vsyncadd [#allocation8], 4294966784 }
 0x148   :  { %334 = vsyncpa [#allocation8], 1 }

</bundles_post_ra>
